<compile_context>
chip_gen: v6e
topology: v6e:2x2x1
jax: 0.10.0
libtpu: 0.0.40
codegen_flags: <defaults>
</compile_context>

<pallas_src>
import math

import jax
import jax.numpy as jnp
from jax.experimental import pallas as pl
from jax.experimental.pallas import tpu as pltpu

_SQRT_2_OVER_PI = 0.7978845608028654


def _gelu(x):
    # GELU(approximate='tanh'), usable both inside kernels and in plain JAX.
    return 0.5 * x * (1.0 + jnp.tanh(_SQRT_2_OVER_PI * (x + 0.044715 * x * x * x)))


# ---------------------------------------------------------------------------
# Generic row-tiled pallas_call helper
# ---------------------------------------------------------------------------
def _row_call(kernel, row_inputs, full_inputs, out_cols, out_dtype, tile_rows=256):
    """Tile all `row_inputs` (each (N, Ci)) over rows; `full_inputs` passed whole."""
    n = row_inputs[0].shape[0]
    # Bounded tile: full-N block only when N is already small, otherwise a fixed
    # multiple-of-8 tile with a cdiv grid (ragged last block is fine; rows are
    # independent).  Keeps VMEM bounded on v7x (64 MiB) for large N.
    tm = n if n <= tile_rows else tile_rows
    grid = (pl.cdiv(n, tm),)
    in_specs = [pl.BlockSpec((tm, a.shape[1]), lambda i: (i, 0)) for a in row_inputs]
    in_specs += [pl.BlockSpec(a.shape, lambda i, _nd=a.ndim: (0,) * _nd) for a in full_inputs]
    out_spec = pl.BlockSpec((tm, out_cols), lambda i: (i, 0))
    return pl.pallas_call(
        kernel,
        out_shape=jax.ShapeDtypeStruct((n, out_cols), out_dtype),
        grid_spec=pltpu.PrefetchScalarGridSpec(
            num_scalar_prefetch=0,
            grid=grid,
            in_specs=in_specs,
            out_specs=out_spec,
        ),
        compiler_params=pltpu.CompilerParams(
            dimension_semantics=("parallel",),
        ),
    )(*row_inputs, *full_inputs)


# ---------------------------------------------------------------------------
# Kernels
# ---------------------------------------------------------------------------
def _ln_withbias_kernel(x_ref, seg_ref, w_ref, b_ref, o_ref):
    # x_ref: (tm, L) with L = fold*C lanes.  seg_ref: (L, L) segment-mean matrix
    # (entry 1/C when both lanes belong to the same C-wide segment) -> the mean
    # of each folded row's segment, broadcast back to its lanes, via one MXU op.
    x = x_ref[...].astype(jnp.float32)
    seg = seg_ref[...]
    m = jnp.dot(x, seg, preferred_element_type=jnp.float32)        # E[x]
    m2 = jnp.dot(x * x, seg, preferred_element_type=jnp.float32)   # E[x^2]
    var = m2 - m * m                                               # unbiased=False, one pass
    inv = jax.lax.rsqrt(var + 1e-5)
    y = (x - m) * inv * w_ref[...].astype(jnp.float32) + b_ref[...].astype(jnp.float32)
    o_ref[...] = y.astype(o_ref.dtype)


def _instnorm_kernel(x_ref, w_ref, b_ref, o_ref):
    # x_ref: (tm, H*W); w_ref/b_ref: (tm, 1) per-row affine params.
    x = x_ref[...].astype(jnp.float32)
    m = jnp.mean(x, axis=-1, keepdims=True)
    m2 = jnp.mean(x * x, axis=-1, keepdims=True)
    var = m2 - m * m
    inv = jax.lax.rsqrt(var + 1e-5)
    y = (x - m) * inv * w_ref[...].astype(jnp.float32) + b_ref[...].astype(jnp.float32)
    o_ref[...] = y.astype(o_ref.dtype)


def _matmul_bias_kernel(x_ref, w_ref, b_ref, o_ref):
    x = x_ref[...].astype(jnp.float32)
    w = w_ref[...].astype(jnp.float32)
    y = jnp.dot(x, w, preferred_element_type=jnp.float32) + b_ref[...].astype(jnp.float32)
    o_ref[...] = y.astype(o_ref.dtype)


def _gelu_kernel(x_ref, o_ref):
    o_ref[...] = _gelu(x_ref[...].astype(jnp.float32)).astype(o_ref.dtype)


def _sub_gelu_kernel(x_ref, d_ref, o_ref):
    x = x_ref[...].astype(jnp.float32)
    d = d_ref[...].astype(jnp.float32)
    o_ref[...] = (x - _gelu(d)).astype(o_ref.dtype)


def _make_residual_gelu_kernel(lam):
    def kernel(x_ref, y_ref, r_ref, o_ref):
        x = x_ref[...].astype(jnp.float32)
        y = y_ref[...].astype(jnp.float32)
        r = r_ref[...].astype(jnp.float32)
        o_ref[...] = (x + y + lam * _gelu(r)).astype(o_ref.dtype)
    return kernel


def _dual_gate_kernel(x1_ref, x2_ref, o_ref):
    x1 = x1_ref[...].astype(jnp.float32)
    x2 = x2_ref[...].astype(jnp.float32)
    o_ref[...] = (_gelu(x2) * x1 + _gelu(x1) * x2).astype(o_ref.dtype)


def _make_head_attn_kernel(num_heads, dim_head, scale):
    c = num_heads * dim_head

    def kernel(qkv_ref, o_ref):
        qkv = qkv_ref[...].astype(jnp.float32)   # (tm, 3*c): [q | k | v], head-major
        qs = [qkv[:, i * dim_head:(i + 1) * dim_head] for i in range(num_heads)]
        ks = [qkv[:, c + i * dim_head:c + (i + 1) * dim_head] for i in range(num_heads)]
        vs = [qkv[:, 2 * c + i * dim_head:2 * c + (i + 1) * dim_head] for i in range(num_heads)]
        outs = []
        for i in range(num_heads):
            scores = [jnp.sum(qs[i] * ks[j], axis=-1, keepdims=True) * scale
                      for j in range(num_heads)]
            s = scores[0] if num_heads == 1 else jnp.concatenate(scores, axis=-1)  # (tm, nh)
            s = s - jnp.max(s, axis=-1, keepdims=True)
            p = jnp.exp(s)
            p = p / jnp.sum(p, axis=-1, keepdims=True)
            oi = p[:, 0:1] * vs[0]
            for j in range(1, num_heads):
                oi = oi + p[:, j:j + 1] * vs[j]
            outs.append(oi)
        out = outs[0] if num_heads == 1 else jnp.concatenate(outs, axis=-1)
        o_ref[...] = out.astype(o_ref.dtype)

    return kernel


# ---------------------------------------------------------------------------
# Wrappers (layout plumbing around the kernels)
# ---------------------------------------------------------------------------
def layernorm_withbias(x, weight, bias, tile_rows=512):
    """LayerNorm(dim, 'WithBias') including the to_3d / to_4d rearranges."""
    b, c, h, w = x.shape
    x2 = jnp.transpose(x, (0, 2, 3, 1)).reshape(b * h * w, c)
    n = x2.shape[0]
    fold = 1
    if c < 128 and 128 % c == 0 and n % (128 // c) == 0:
        fold = 128 // c            # lane-fold small C into lane-dense 128-wide rows
    L = fold * c
    xf = x2.reshape(n // fold, L)
    wf = jnp.tile(weight, fold).reshape(1, L).astype(jnp.float32)
    bf = jnp.tile(bias, fold).reshape(1, L).astype(jnp.float32)
    lane = jnp.arange(L)
    seg = (lane[:, None] // c == lane[None, :] // c).astype(jnp.float32) / float(c)
    out = _row_call(_ln_withbias_kernel, [xf], [seg, wf, bf], L, x.dtype, tile_rows)
    out = out.reshape(n, c)
    return jnp.transpose(out.reshape(b, h, w, c), (0, 3, 1, 2))


def instance_norm(x, weight, bias, tile_rows=256):
    b, c, h, w = x.shape
    x2 = x.reshape(b * c, h * w)
    w2 = jnp.tile(weight, b).reshape(b * c, 1).astype(jnp.float32)
    b2 = jnp.tile(bias, b).reshape(b * c, 1).astype(jnp.float32)
    out = _row_call(_instnorm_kernel, [x2, w2, b2], [], h * w, x.dtype, tile_rows)
    return out.reshape(b, c, h, w)


def conv1x1(x, w, bias=None, tile_rows=256):
    b, cin, h, wid = x.shape
    cout = w.shape[0]
    x2 = jnp.transpose(x, (0, 2, 3, 1)).reshape(b * h * wid, cin)
    wm = w.reshape(cout, cin).T.astype(jnp.float32)
    bb = bias if bias is not None else jnp.zeros((cout,), jnp.float32)
    b2 = bb.reshape(1, cout).astype(jnp.float32)
    out = _row_call(_matmul_bias_kernel, [x2], [wm, b2], cout, x.dtype, tile_rows)
    return jnp.transpose(out.reshape(b, h, wid, cout), (0, 3, 1, 2))


def dwconv3x3(x, w, bias=None):
    # TODO(synk): 3x3 depthwise conv stays on XLA's conv; a halo-exchange Pallas kernel is future work.
    c = x.shape[1]
    out = jax.lax.conv_general_dilated(
        x, w, window_strides=(1, 1), padding=((1, 1), (1, 1)),
        dimension_numbers=("NCHW", "OIHW", "NCHW"), feature_group_count=c)
    if bias is not None:
        out = out + bias[None, :, None, None]
    return out


def _elementwise(kernel, arrs, tile_rows=256):
    shp = arrs[0].shape
    flat = [a.reshape(shp[0] * shp[1], -1) for a in arrs]
    out = _row_call(kernel, flat, [], flat[0].shape[1], arrs[0].dtype, tile_rows)
    return out.reshape(shp)


# ---------------------------------------------------------------------------
# Module forward (Pallas path)
# ---------------------------------------------------------------------------
def flash_attn_impl(x, p, num_heads):
    b, c, h, w = x.shape
    dim_head = c // num_heads
    qkv = conv1x1(x, p["q1_w"], p["q1_b"])
    qkv = dwconv3x3(qkv, p["q2_w"], p["q2_b"])
    qkv = dwconv3x3(qkv, p["q3_w"], p["q3_b"])
    qkv = instance_norm(qkv, p["norm3_w"], p["norm3_b"])
    # torch: .view(b, -1, 3, nh, dh) on the NCHW buffer == raw row-major reshape.
    qkv_rows = qkv.reshape(b * h * w, 3 * c)
    was_f32 = x.dtype == jnp.float32
    if was_f32:
        qkv_rows = qkv_rows.astype(jnp.bfloat16)
    # TODO(synk): training-mode FlashSelfAttention branch not implemented; this is the eval branch.
    attn_kernel = _make_head_attn_kernel(num_heads, dim_head, 1.0 / math.sqrt(dim_head))
    out_rows = _row_call(attn_kernel, [qkv_rows], [], c, qkv_rows.dtype, tile_rows=256)
    if was_f32:
        out_rows = out_rows.astype(jnp.float32)
    out = out_rows.reshape(b, c, h, w)            # torch: out.view(x.shape)
    out = conv1x1(out, p["fin_w"], p["fin_b"])
    out = instance_norm(out, p["norm_w"], p["norm_b"])
    return out + x


def bp_attention(x, p, num_heads, lambda_num):
    y_raw = flash_attn_impl(x, p["L1"], num_heads)
    y = _elementwise(_gelu_kernel, [y_raw])
    d_raw = flash_attn_impl(y, p["D1"], num_heads)
    xd = _elementwise(_sub_gelu_kernel, [x, d_raw])                # x - gelu(d)
    r_raw = flash_attn_impl(xd, p["L2"], num_heads)
    combine = _make_residual_gelu_kernel(float(lambda_num))        # x + y + lam*gelu(r)
    return _elementwise(combine, [x, y, r_raw])


def bp_dualgate_ffn(x, p):
    xL1 = conv1x1(x, p["in_w"], None)
    xD = dwconv3x3(xL1, p["D_w"], None)
    xR = dwconv3x3(xL1 - xD, p["L2_w"], None)
    g = dwconv3x3(xL1 + xR, p["dw_w"], None)
    hid = g.shape[1] // 2
    x1, x2 = g[:, :hid], g[:, hid:]
    gate = _elementwise(_dual_gate_kernel, [x1, x2])               # gelu(x2)*x1 + gelu(x1)*x2
    return conv1x1(gate, p["out_w"], None) + x


def bp_transformer_block(x, t, params, num_heads=1, lambda_num=1.0, time_emb_dim=0):
    x = x + bp_attention(layernorm_withbias(x, params["norm1_w"], params["norm1_b"]),
                         params["attn"], num_heads, lambda_num)
    # TODO(synk): time-embedding MLP path (time_emb_dim>0) not implemented; Identity path only.
    x = x + bp_dualgate_ffn(layernorm_withbias(x, params["norm2_w"], params["norm2_b"]),
                            params["ffn"])
    return x, t


# ---------------------------------------------------------------------------
# Pure-JAX reference (mirrors the torch forward)
# ---------------------------------------------------------------------------
def _ref_conv1x1(x, w, b=None):
    cout, cin = w.shape[0], w.shape[1]
    y = jnp.einsum("bchw,oc->bohw", x, w.reshape(cout, cin),
                   precision=jax.lax.Precision.HIGHEST)
    if b is not None:
        y = y + b[None, :, None, None]
    return y


def _ref_layernorm(x, w, b):
    x3 = jnp.transpose(x, (0, 2, 3, 1))
    mu = jnp.mean(x3, axis=-1, keepdims=True)
    var = jnp.mean((x3 - mu) ** 2, axis=-1, keepdims=True)
    y = (x3 - mu) / jnp.sqrt(var + 1e-5) * w + b
    return jnp.transpose(y, (0, 3, 1, 2))


def _ref_instnorm(x, w, b):
    mu = jnp.mean(x, axis=(2, 3), keepdims=True)
    var = jnp.mean((x - mu) ** 2, axis=(2, 3), keepdims=True)
    return (x - mu) / jnp.sqrt(var + 1e-5) * w[None, :, None, None] + b[None, :, None, None]


def _ref_flash_attn_impl(x, p, num_heads):
    b, c, h, w = x.shape
    dh = c // num_heads
    qkv = _ref_conv1x1(x, p["q1_w"], p["q1_b"])
    qkv = dwconv3x3(qkv, p["q2_w"], p["q2_b"])
    qkv = dwconv3x3(qkv, p["q3_w"], p["q3_b"])
    qkv = _ref_instnorm(qkv, p["norm3_w"], p["norm3_b"])
    qkv = qkv.reshape(b, h * w, 3, num_heads, dh)
    was_f32 = x.dtype == jnp.float32
    if was_f32:
        qkv = qkv.astype(jnp.bfloat16)
    q = qkv[:, :, 0].astype(jnp.float32)
    k = qkv[:, :, 1].astype(jnp.float32)
    v = qkv[:, :, 2].astype(jnp.float32)
    s = jnp.einsum("bsid,bsjd->bsij", q, k, precision=jax.lax.Precision.HIGHEST) / math.sqrt(dh)
    pr = jax.nn.softmax(s, axis=-1)
    o = jnp.einsum("bsij,bsjd->bsid", pr, v, precision=jax.lax.Precision.HIGHEST)
    o = o.astype(jnp.bfloat16) if was_f32 else o.astype(x.dtype)
    if was_f32:
        o = o.astype(jnp.float32)
    out = o.reshape(b, c, h, w)
    out = _ref_conv1x1(out, p["fin_w"], p["fin_b"])
    out = _ref_instnorm(out, p["norm_w"], p["norm_b"])
    return out + x


def _ref_bp_attention(x, p, num_heads, lambda_num):
    y = _gelu(_ref_flash_attn_impl(x, p["L1"], num_heads))
    d = _gelu(_ref_flash_attn_impl(y, p["D1"], num_heads))
    r = _gelu(_ref_flash_attn_impl(x - d, p["L2"], num_heads))
    return x + y + r * lambda_num


def _ref_bp_ffn(x, p):
    xL1 = _ref_conv1x1(x, p["in_w"], None)
    xD = dwconv3x3(xL1, p["D_w"], None)
    xR = dwconv3x3(xL1 - xD, p["L2_w"], None)
    g = dwconv3x3(xL1 + xR, p["dw_w"], None)
    hid = g.shape[1] // 2
    x1, x2 = g[:, :hid], g[:, hid:]
    gate = _gelu(x2) * x1 + _gelu(x1) * x2
    return _ref_conv1x1(gate, p["out_w"], None) + x


def bp_transformer_block_reference(x, t, params, num_heads=1, lambda_num=1.0):
    x = x + _ref_bp_attention(_ref_layernorm(x, params["norm1_w"], params["norm1_b"]),
                              params["attn"], num_heads, lambda_num)
    x = x + _ref_bp_ffn(_ref_layernorm(x, params["norm2_w"], params["norm2_b"]),
                        params["ffn"])
    return x, t


# ---------------------------------------------------------------------------
# Deterministic parameter init and test
# ---------------------------------------------------------------------------
def init_params(key, dim, ffn_expansion_factor):
    hidden = int(dim * ffn_expansion_factor)
    hid2 = 2 * hidden
    kit = iter(jax.random.split(key, 40))

    def rnd(shape, scale=0.1):
        return jax.random.normal(next(kit), shape, jnp.float32) * scale

    def attn_branch():
        return {
            "q1_w": rnd((3 * dim, dim, 1, 1)), "q1_b": rnd((3 * dim,), 0.02),
            "q2_w": rnd((3 * dim, 1, 3, 3)), "q2_b": rnd((3 * dim,), 0.02),
            "q3_w": rnd((3 * dim, 1, 3, 3)), "q3_b": rnd((3 * dim,), 0.02),
            "fin_w": rnd((dim, dim, 1, 1)), "fin_b": rnd((dim,), 0.02),
            "norm3_w": jnp.ones((3 * dim,), jnp.float32),
            "norm3_b": jnp.zeros((3 * dim,), jnp.float32),
            "norm_w": jnp.ones((dim,), jnp.float32),
            "norm_b": jnp.zeros((dim,), jnp.float32),
        }

    return {
        "norm1_w": jnp.ones((dim,), jnp.float32), "norm1_b": jnp.zeros((dim,), jnp.float32),
        "norm2_w": jnp.ones((dim,), jnp.float32), "norm2_b": jnp.zeros((dim,), jnp.float32),
        "attn": {"L1": attn_branch(), "D1": attn_branch(), "L2": attn_branch()},
        "ffn": {
            "in_w": rnd((hid2, dim, 1, 1)),
            "D_w": rnd((hid2, 1, 3, 3)),
            "L2_w": rnd((hid2, 1, 3, 3)),
            "dw_w": rnd((hid2, 1, 3, 3)),
            "out_w": rnd((dim, hidden, 1, 1)),
        },
    }


if __name__ == "__main__":
    key = jax.random.PRNGKey(0)
    kx, kp = jax.random.split(key)

    B, C, H, W = 2, 32, 16, 16          # dim=32, num_heads=1, spatial 16x16
    num_heads = 1
    x = jax.random.normal(kx, (B, C, H, W), dtype=jnp.float32)
    params = init_params(kp, C, 2.66)

    out, t_out = bp_transformer_block(x, None, params, num_heads=num_heads, lambda_num=1.0)
    out = jax.block_until_ready(out)

    ref, _ = bp_transformer_block_reference(x, None, params, num_heads=num_heads, lambda_num=1.0)
    ref = jax.block_until_ready(ref)

    assert out.shape == x.shape and out.dtype == x.dtype
    assert t_out is None
    assert bool(jnp.all(jnp.isfinite(out)))
    max_err = float(jnp.max(jnp.abs(out - ref)))
    assert jnp.allclose(out, ref, atol=1e-2, rtol=1e-2), max_err

    print("KERNEL_OK")
</pallas_src>

<mosaic_0001>
module attributes {stable_mosaic.version = 11 : i64} {
  func.func @_ln_withbias_kernel(%arg0: i32, %arg1: memref<128x128xf32, #tpu.memory_space<vmem>>, %arg2: memref<128x128xf32, #tpu.memory_space<vmem>>, %arg3: memref<1x128xf32, #tpu.memory_space<vmem>>, %arg4: memref<1x128xf32, #tpu.memory_space<vmem>>, %arg5: memref<128x128xf32, #tpu.memory_space<vmem>>) attributes {dimension_semantics = [#tpu.dimension_semantics<parallel>], iteration_bounds = array<i64: 1>, scalar_prefetch = 0 : i64, scratch_operands = 0 : i64, tpu.core_type = #tpu.core_type<tc>, window_params = [{transform_indices = @transform_0, window_bounds = array<i64: 128, 128>}, {pipeline_mode = #tpu.pipeline_mode<synchronous>, transform_indices = @transform_1, window_bounds = array<i64: 128, 128>}, {pipeline_mode = #tpu.pipeline_mode<synchronous>, transform_indices = @transform_2, window_bounds = array<i64: 1, 128>}, {pipeline_mode = #tpu.pipeline_mode<synchronous>, transform_indices = @transform_3, window_bounds = array<i64: 1, 128>}, {transform_indices = @transform_4, window_bounds = array<i64: 128, 128>}]} {
    %c0 = arith.constant 0 : index
    %c0_0 = arith.constant 0 : index
    %0 = vector.load %arg1[%c0, %c0_0] : memref<128x128xf32, #tpu.memory_space<vmem>>, vector<128x128xf32>
    %c0_1 = arith.constant 0 : index
    %c0_2 = arith.constant 0 : index
    %1 = vector.load %arg2[%c0_1, %c0_2] : memref<128x128xf32, #tpu.memory_space<vmem>>, vector<128x128xf32>
    %cst = arith.constant dense<0.000000e+00> : vector<128x128xf32>
    %2 = tpu.matmul %0, %1, %cst {dimension_numbers = #tpu.dot_dimension_numbers<[1], [0], [0], [1], [0, 0, 1, 1], [], []>} : vector<128x128xf32>, vector<128x128xf32>, vector<128x128xf32> -> vector<128x128xf32>
    %3 = arith.mulf %0, %0 : vector<128x128xf32>
    %cst_3 = arith.constant dense<0.000000e+00> : vector<128x128xf32>
    %4 = tpu.matmul %3, %1, %cst_3 {dimension_numbers = #tpu.dot_dimension_numbers<[1], [0], [0], [1], [0, 0, 1, 1], [], []>} : vector<128x128xf32>, vector<128x128xf32>, vector<128x128xf32> -> vector<128x128xf32>
    %5 = arith.mulf %2, %2 : vector<128x128xf32>
    %6 = arith.subf %4, %5 : vector<128x128xf32>
    %cst_4 = arith.constant 9.99999974E-6 : f32
    %7 = vector.broadcast %cst_4 : f32 to vector<128x128xf32>
    %8 = arith.addf %6, %7 : vector<128x128xf32>
    %9 = math.rsqrt %8 : vector<128x128xf32>
    %10 = arith.subf %0, %2 : vector<128x128xf32>
    %11 = arith.mulf %10, %9 : vector<128x128xf32>
    %c0_5 = arith.constant 0 : index
    %c0_6 = arith.constant 0 : index
    %12 = vector.load %arg3[%c0_5, %c0_6] : memref<1x128xf32, #tpu.memory_space<vmem>>, vector<1x128xf32>
    %13 = vector.broadcast %12 : vector<1x128xf32> to vector<128x128xf32>
    %14 = arith.mulf %11, %13 : vector<128x128xf32>
    %c0_7 = arith.constant 0 : index
    %c0_8 = arith.constant 0 : index
    %15 = vector.load %arg4[%c0_7, %c0_8] : memref<1x128xf32, #tpu.memory_space<vmem>>, vector<1x128xf32>
    %16 = vector.broadcast %15 : vector<1x128xf32> to vector<128x128xf32>
    %17 = arith.addf %14, %16 : vector<128x128xf32>
    %c0_9 = arith.constant 0 : index
    %c0_10 = arith.constant 0 : index
    %18 = vector.load %arg5[%c0_9, %c0_10] : memref<128x128xf32, #tpu.memory_space<vmem>>, vector<128x128xf32>
    tpu.vector_store %arg5[%c0_9, %c0_10], %17 {strides = array<i32>} : memref<128x128xf32, #tpu.memory_space<vmem>>, vector<128x128xf32>,
    return
  }
  func.func @transform_0(%arg0: i32) -> (i32, i32) {
    %c0_i32 = arith.constant 0 : i32
    %c0_i32_0 = arith.constant 0 : i32
    return %arg0, %c0_i32 : i32, i32
  }
  func.func @transform_1(%arg0: i32) -> (i32, i32) {
    %c0_i32 = arith.constant 0 : i32
    %c0_i32_0 = arith.constant 0 : i32
    %c0_i32_1 = arith.constant 0 : i32
    return %c0_i32, %c0_i32_0 : i32, i32
  }
  func.func @transform_2(%arg0: i32) -> (i32, i32) {
    %c0_i32 = arith.constant 0 : i32
    %c0_i32_0 = arith.constant 0 : i32
    %c0_i32_1 = arith.constant 0 : i32
    return %c0_i32, %c0_i32_0 : i32, i32
  }
  func.func @transform_3(%arg0: i32) -> (i32, i32) {
    %c0_i32 = arith.constant 0 : i32
    %c0_i32_0 = arith.constant 0 : i32
    %c0_i32_1 = arith.constant 0 : i32
    return %c0_i32, %c0_i32_0 : i32, i32
  }
  func.func @transform_4(%arg0: i32) -> (i32, i32) {
    %c0_i32 = arith.constant 0 : i32
    %c0_i32_0 = arith.constant 0 : i32
    return %arg0, %c0_i32 : i32, i32
  }
}

</mosaic_0001>

<bundles_post_ra>
// kernel: tpu_custom_call.1
= control target key start
LH: loop header
LB: loop body
LE: loop exit
PB: predicated region body
PF: predicated region fallthrough
CT: control target
= control target key end

     0   :  { %9 = vsyncpa [#allocation3], 0  ;;  %s1102_s0 = inlined_call_operand.hbm [shape: f32[128,128], index: 0, kind: input, shape index: {}]   ;;  %s1103_s1 = inlined_call_operand.hbm [shape: f32[128,128], index: 1, kind: input, shape index: {}]   ;;  %s1104_s2 = inlined_call_operand.vmem [shape: f32[1,128], index: 2, kind: input, shape index: {}]   ;;  %s1105_s3 = inlined_call_operand.vmem [shape: f32[1,128], index: 3, kind: input, shape index: {}]   ;;  %s1106_s4 = inlined_call_operand.hbm [shape: f32[128,128], index: 4, kind: output, shape index: {}]  }
   0x1   :  { %10 = vsyncpa [#allocation6], 0 }
   0x2   :  { %11 = vsyncpa [#allocation4], 0  ;;  %s841_s15 = smov [#allocation2]  }
   0x3   :  { %s17_s16 = sshll.u32 %s841_s15, 4  ;;  %s18_s16 = int_to_ptr.vmem [resolvable:$true] %s17_s16 }
   0x4   :  { %s783_s17 = scalar_lea.vmem %s18_s16, 2048  ;;  %p788_p1 = scmp.lt.s32.totalorder %s18_s16, %s18_s16 }
   0x5   :  { %p784_p0 = scmp.ne.s32.totalorder %s18_s16, %s783_s17  ;;  %p789_p2 = scmp.lt.s32.totalorder %s783_s17, %s783_s17 }
   0x7   :  { %p790_p3 = por %p789_p2, %p788_p1 }
   0x9   :  { %p791_p4 = pnand %p790_p3, %p784_p0 }
   0xb   :  { %794 = shalt.err (!%p791_p4)
}
   0xc   :  { %s842_s18 = smov 128   ;;  %s843_s19 = smov 8  }
   0xd   :  { %23 = dma.hbm_to_vmem [thread:$0]  %s1102_s0, 2048, %s18_s16, [#allocation3], %s842_s18, %s842_s18, %s843_s19  }
   0xe   :  { %s844_s22 = smov [#allocation5]  }
   0xf   :  { %s29_s23 = sshll.u32 %s844_s22, 4  ;;  %s30_s23 = int_to_ptr.vmem [resolvable:$true] %s29_s23 }
  0x10   :  { %s803_s24 = scalar_lea.vmem %s30_s23, 2048  ;;  %p808_p6 = scmp.lt.s32.totalorder %s30_s23, %s30_s23 }
  0x11   :  { %p804_p5 = scmp.ne.s32.totalorder %s30_s23, %s803_s24  ;;  %p809_p7 = scmp.lt.s32.totalorder %s803_s24, %s803_s24 }
  0x13   :  { %p810_p8 = por %p809_p7, %p808_p6 }
  0x15   :  { %p811_p9 = pnand %p810_p8, %p804_p5 }
  0x17   :  { %814 = shalt.err (!%p811_p9)
}
  0x18   :  { %35 = dma.hbm_to_vmem [thread:$0]  %s1103_s1, 2048, %s30_s23, [#allocation6], %s842_s18, %s842_s18, %s843_s19  }
  0x19   :  { %835 = dma.done.wait [#allocation3], 2048  }
  0x1a   :  { %836 = vsyncadd [#allocation3], 4294965248 }
  0x1b   :  { %837 = dma.done.wait [#allocation6], 2048  }
  0x1c   :  { %838 = vsyncadd [#allocation6], 4294965248  ;;  %v77_v0 = vld [vmem:[#allocation5 + $0x78] sm:$0xff]  ;;  %v76_v1 = vld [vmem:[#allocation5 + $0x70] sm:$0xff] }
  0x1d   :  { %626 = vmatprep.subr.mxu0 %v77_v0  ;;  %682 = vmatprep.subr.mxu1 %v77_v0  ;;  %v75_v2 = vld [vmem:[#allocation5 + $0x68] sm:$0xff]  ;;  %v74_v3 = vld [vmem:[#allocation5 + $0x60] sm:$0xff]  ;;  %v73_v4 = vld [vmem:[#allocation5 + $0x58] sm:$0xff] }
  0x1e   :  { %627 = vmatpush3.msra.mxu0 %v77_v0  ;;  %683 = vmatpush3.msra.mxu1 %v77_v0  ;;  %v72_v5 = vld [vmem:[#allocation5 + $0x50] sm:$0xff]  ;;  %v71_v6 = vld [vmem:[#allocation5 + $0x48] sm:$0xff]  ;;  %v70_v7 = vld [vmem:[#allocation5 + $0x40] sm:$0xff] }
  0x1f   :  { %628 = vmatprep.subr.mxu0 %v76_v1  ;;  %684 = vmatprep.subr.mxu1 %v76_v1  ;;  %v69_v8 = vld [vmem:[#allocation5 + $0x38] sm:$0xff]  ;;  %v68_v9 = vld [vmem:[#allocation5 + $0x30] sm:$0xff]  ;;  %v67_v10 = vld [vmem:[#allocation5 + $0x28] sm:$0xff] }
  0x20   :  { %629 = vmatpush3.msra.mxu0 %v76_v1  ;;  %685 = vmatpush3.msra.mxu1 %v76_v1  ;;  %v66_v11 = vld [vmem:[#allocation5 + $0x20] sm:$0xff]  ;;  %v65_v12 = vld [vmem:[#allocation5 + $0x18] sm:$0xff]  ;;  %v64_v13 = vld [vmem:[#allocation5 + $0x10] sm:$0xff] }
  0x21   :  { %630 = vmatprep.subr.mxu0 %v75_v2  ;;  %686 = vmatprep.subr.mxu1 %v75_v2  ;;  %v63_v14 = vld [vmem:[#allocation5 + $0x8] sm:$0xff]  ;;  %v883_v15 = vld [vmem:[#allocation2] sm:$0xff]  ;;  %v887_v18 = vld [vmem:[#allocation2 + $0x10] sm:$0xff] }
  0x22   :  { %631 = vmatpush3.msra.mxu0 %v75_v2  ;;  %687 = vmatpush3.msra.mxu1 %v75_v2  ;;  %v885_v16 = vld [vmem:[#allocation2 + $0x8] sm:$0xff]  ;;  %v62_v17 = vld [vmem:[#allocation5] sm:$0xff]  ;;  %v223_v19 = vmul.f32 %v883_v15, %v883_v15  ;;  %v225_v21 = vmul.f32 %v887_v18, %v887_v18  ;;  %v895_v22 = vld [vmem:[#allocation2 + $0x18] sm:$0xff] }
  0x23   :  { %632 = vmatprep.subr.mxu0 %v74_v3  ;;  %688 = vmatprep.subr.mxu1 %v74_v3  ;;  %v224_v20 = vmul.f32 %v885_v16, %v885_v16  ;;  %v898_v23 = vld [vmem:[#allocation2 + $0x20] sm:$0xff]  ;;  %v226_v24 = vmul.f32 %v895_v22, %v895_v22  ;;  %v906_v26 = vld [vmem:[#allocation2 + $0x28] sm:$0xff]  ;;  %v908_v27 = vld [vmem:[#allocation2 + $0x30] sm:$0xff] }
  0x24   :  { %633 = vmatpush3.msra.mxu0 %v74_v3  ;;  %689 = vmatpush3.msra.mxu1 %v74_v3  ;;  %v227_v25 = vmul.f32 %v898_v23, %v898_v23  ;;  %v228_v28 = vmul.f32 %v906_v26, %v906_v26  ;;  %v229_v29 = vmul.f32 %v908_v27, %v908_v27  ;;  %v916_v30 = vld [vmem:[#allocation2 + $0x38] sm:$0xff]  ;;  %v918_v31 = vld [vmem:[#allocation2 + $0x40] sm:$0xff]  ;;  %v926_v34 = vld [vmem:[#allocation2 + $0x48] sm:$0xff] }
  0x25   :  { %634 = vmatprep.subr.mxu0 %v73_v4  ;;  %690 = vmatprep.subr.mxu1 %v73_v4  ;;  %v230_v32 = vmul.f32 %v916_v30, %v916_v30  ;;  %v231_v33 = vmul.f32 %v918_v31, %v918_v31  ;;  %v928_v35 = vld [vmem:[#allocation2 + $0x50] sm:$0xff]  ;;  %v232_v36 = vmul.f32 %v926_v34, %v926_v34  ;;  %v936_v38 = vld [vmem:[#allocation2 + $0x58] sm:$0xff]  ;;  %v938_v39 = vld [vmem:[#allocation2 + $0x60] sm:$0xff] }
  0x26   :  { %635 = vmatpush3.msra.mxu0 %v73_v4  ;;  %691 = vmatpush3.msra.mxu1 %v73_v4  ;;  %v233_v37 = vmul.f32 %v928_v35, %v928_v35  ;;  %v234_v40 = vmul.f32 %v936_v38, %v936_v38  ;;  %v235_v41 = vmul.f32 %v938_v39, %v938_v39  ;;  %v946_v42 = vld [vmem:[#allocation2 + $0x68] sm:$0xff]  ;;  %v948_v43 = vld [vmem:[#allocation2 + $0x70] sm:$0xff]  ;;  %v956_v46 = vld [vmem:[#allocation2 + $0x78] sm:$0xff] }
  0x27   :  { %636 = vmatprep.subr.mxu0 %v72_v5  ;;  %692 = vmatprep.subr.mxu1 %v72_v5  ;;  %v236_v44 = vmul.f32 %v946_v42, %v946_v42  ;;  %v237_v45 = vmul.f32 %v948_v43, %v948_v43  ;;  %v238_v47 = vmul.f32 %v956_v46, %v956_v46 }
  0x28   :  { %637 = vmatpush3.msra.mxu0 %v72_v5  ;;  %693 = vmatpush3.msra.mxu1 %v72_v5 }
  0x29   :  { %638 = vmatprep.subr.mxu0 %v71_v6  ;;  %694 = vmatprep.subr.mxu1 %v71_v6 }
  0x2a   :  { %639 = vmatpush3.msra.mxu0 %v71_v6  ;;  %695 = vmatpush3.msra.mxu1 %v71_v6 }
  0x2b   :  { %640 = vmatprep.subr.mxu0 %v70_v7  ;;  %696 = vmatprep.subr.mxu1 %v70_v7 }
  0x2c   :  { %641 = vmatpush3.msra.mxu0 %v70_v7  ;;  %697 = vmatpush3.msra.mxu1 %v70_v7 }
  0x2d   :  { %642 = vmatprep.subr.mxu0 %v69_v8  ;;  %698 = vmatprep.subr.mxu1 %v69_v8 }
  0x2e   :  { %643 = vmatpush3.msra.mxu0 %v69_v8  ;;  %699 = vmatpush3.msra.mxu1 %v69_v8 }
  0x2f   :  { %644 = vmatprep.subr.mxu0 %v68_v9  ;;  %700 = vmatprep.subr.mxu1 %v68_v9 }
  0x30   :  { %645 = vmatpush3.msra.mxu0 %v68_v9  ;;  %701 = vmatpush3.msra.mxu1 %v68_v9 }
  0x31   :  { %646 = vmatprep.subr.mxu0 %v67_v10  ;;  %702 = vmatprep.subr.mxu1 %v67_v10 }
  0x32   :  { %647 = vmatpush3.msra.mxu0 %v67_v10  ;;  %703 = vmatpush3.msra.mxu1 %v67_v10 }
  0x33   :  { %648 = vmatprep.subr.mxu0 %v66_v11  ;;  %704 = vmatprep.subr.mxu1 %v66_v11 }
  0x34   :  { %649 = vmatpush3.msra.mxu0 %v66_v11  ;;  %705 = vmatpush3.msra.mxu1 %v66_v11 }
  0x35   :  { %650 = vmatprep.subr.mxu0 %v65_v12  ;;  %706 = vmatprep.subr.mxu1 %v65_v12 }
  0x36   :  { %651 = vmatpush3.msra.mxu0 %v65_v12  ;;  %707 = vmatpush3.msra.mxu1 %v65_v12 }
  0x37   :  { %652 = vmatprep.subr.mxu0 %v64_v13  ;;  %708 = vmatprep.subr.mxu1 %v64_v13 }
  0x38   :  { %653 = vmatpush3.msra.mxu0 %v64_v13  ;;  %709 = vmatpush3.msra.mxu1 %v64_v13 }
  0x39   :  { %654 = vmatprep.subr.mxu0 %v63_v14  ;;  %710 = vmatprep.subr.mxu1 %v63_v14 }
  0x3a   :  { %655 = vmatpush3.msra.mxu0 %v63_v14  ;;  %711 = vmatpush3.msra.mxu1 %v63_v14 }
  0x3b   :  { %656 = vmatprep.subr.mxu0 %v62_v17  ;;  %712 = vmatprep.subr.mxu1 %v62_v17 }
  0x3c   :  { %657 = vmatpush3.msra.mxu0 %v62_v17  ;;  %658 = vmatprep.mubr.f32.mxu0 %v883_v15 }
  0x3d   :  { %713 = vmatpush3.msra.mxu1 %v62_v17  ;;  %714 = vmatprep.mubr.f32.mxu1 %v223_v19 }
  0x3e   :  { %659 = vmatmul.mubr.f32.vlgmr.msra.gmra.mxu0 %v885_v16  ;;  %715 = vmatmul.mubr.f32.vlgmr.msra.gmra.mxu1 %v224_v20 }
  0x3f   :  { %661 = vmatprep.mubr.f32.mxu0 %v887_v18  ;;  %717 = vmatprep.mubr.f32.mxu1 %v225_v21 }
  0x42   :  { %662 = vmatmul.mubr.f32.gmra.mxu0 %v895_v22  ;;  %718 = vmatmul.mubr.f32.gmra.mxu1 %v226_v24 }
  0x43   :  { %664 = vmatprep.mubr.f32.mxu0 %v898_v23  ;;  %720 = vmatprep.mubr.f32.mxu1 %v227_v25 }
  0x46   :  { %665 = vmatmul.mubr.f32.gmra.mxu0 %v906_v26  ;;  %721 = vmatmul.mubr.f32.gmra.mxu1 %v228_v28 }
  0x47   :  { %667 = vmatprep.mubr.f32.mxu0 %v908_v27  ;;  %723 = vmatprep.mubr.f32.mxu1 %v229_v29 }
  0x4a   :  { %668 = vmatmul.mubr.f32.gmra.mxu0 %v916_v30  ;;  %724 = vmatmul.mubr.f32.gmra.mxu1 %v230_v32 }
  0x4b   :  { %670 = vmatprep.mubr.f32.mxu0 %v918_v31  ;;  %726 = vmatprep.mubr.f32.mxu1 %v231_v33 }
  0x4e   :  { %671 = vmatmul.mubr.f32.gmra.mxu0 %v926_v34  ;;  %727 = vmatmul.mubr.f32.gmra.mxu1 %v232_v36 }
  0x4f   :  { %673 = vmatprep.mubr.f32.mxu0 %v928_v35  ;;  %729 = vmatprep.mubr.f32.mxu1 %v233_v37 }
  0x52   :  { %674 = vmatmul.mubr.f32.gmra.mxu0 %v936_v38  ;;  %730 = vmatmul.mubr.f32.gmra.mxu1 %v234_v40 }
  0x53   :  { %676 = vmatprep.mubr.f32.mxu0 %v938_v39  ;;  %732 = vmatprep.mubr.f32.mxu1 %v235_v41 }
  0x56   :  { %677 = vmatmul.mubr.f32.gmra.mxu0 %v946_v42  ;;  %733 = vmatmul.mubr.f32.gmra.mxu1 %v236_v44 }
  0x57   :  { %679 = vmatprep.mubr.f32.mxu0 %v948_v43  ;;  %735 = vmatprep.mubr.f32.mxu1 %v237_v45 }
  0x5a   :  { %680 = vmatmul.mubr.f32.gmra.mxu0 %v956_v46  ;;  %736 = vmatmul.mubr.f32.gmra.mxu1 %v238_v47 }
  0xfe   :  { %v660_v48 = vpop.f32.mrf.mxu0  ;;  %v716_v49 = vpop.f32.mrf.mxu1 }
  0xff   :  { %v385_v50 = vmul.f32 %v660_v48, %v660_v48  ;;  %v449_v37 = vsub.f32 %v885_v16, %v660_v48 }
 0x100   :  { %v963_v51 = vpop.f32.mrf.mxu0  ;;  %v305_v52 = vpop.f32.mrf.mxu1 }
 0x101   :  { %v401_v53 = vsub.f32 %v716_v49, %v385_v50  ;;  %v384_v54 = vmul.f32 %v963_v51, %v963_v51  ;;  %v1003_v50 = vld [vmem:[%s1104_s2] ss:$0 sm:$0xff]  ;;  %s845_s2 = smov [#allocation7]  }
 0x102   :  { %v967_v55 = vpop.f32.mrf.mxu0  ;;  %v719_v56 = vpop.f32.mrf.mxu1 }
 0x103   :  { %v417_v57 = vadd.f32 1e-05, %v401_v53  ;;  %v400_v58 = vsub.f32 %v305_v52, %v384_v54  ;;  %v387_v59 = vmul.f32 %v967_v55, %v967_v55  ;;  %v448_v52 = vsub.f32 %v883_v15, %v963_v51 }
 0x104   :  { %v971_v60 = vpop.f32.mrf.mxu0  ;;  %v315_v61 = vpop.f32.mrf.mxu1 }
 0x105   :  { %743 = vrsqrt.f32 %v417_v57  ;;  %v416_v62 = vadd.f32 1e-05, %v400_v58  ;;  %v403_v63 = vsub.f32 %v719_v56, %v387_v59  ;;  %v386_v0 = vmul.f32 %v971_v60, %v971_v60  ;;  %v1012_v58 = vld [vmem:[%s1105_s3] ss:$0 sm:$0xff]  ;;  %s547_s3 = sshll.u32 %s845_s2, 4  ;;  %s548_s3 = int_to_ptr.vmem [resolvable:$true] %s547_s3 }
 0x106   :  { %v975_v1 = vpop.f32.mrf.mxu0  ;;  %v722_v2 = vpop.f32.mrf.mxu1  ;;  %v451_v59 = vsub.f32 %v895_v22, %v967_v55  ;;  %s815_s29 = scalar_lea.vmem %s548_s3, 2048  ;;  %p820_p11 = scmp.lt.s32.totalorder %s548_s3, %s548_s3 }
 0x107   :  { %745 = vrsqrt.f32 %v416_v62  ;;  %v419_v3 = vadd.f32 1e-05, %v403_v63  ;;  %v402_v4 = vsub.f32 %v315_v61, %v386_v0  ;;  %v389_v5 = vmul.f32 %v975_v1, %v975_v1  ;;  %p816_p10 = scmp.ne.s32.totalorder %s548_s3, %s815_s29  ;;  %p821_p12 = scmp.lt.s32.totalorder %s815_s29, %s815_s29 }
 0x108   :  { %v979_v6 = vpop.f32.mrf.mxu0  ;;  %v325_v7 = vpop.f32.mrf.mxu1 }
 0x109   :  { %747 = vrsqrt.f32 %v419_v3  ;;  %v418_v8 = vadd.f32 1e-05, %v402_v4  ;;  %v405_v9 = vsub.f32 %v722_v2, %v389_v5  ;;  %v388_v10 = vmul.f32 %v979_v6, %v979_v6  ;;  %p822_p13 = por %p821_p12, %p820_p11 }
 0x10a   :  { %v983_v11 = vpop.f32.mrf.mxu0  ;;  %v725_v12 = vpop.f32.mrf.mxu1  ;;  %v450_v3 = vsub.f32 %v887_v18, %v971_v60 }
 0x10b   :  { %749 = vrsqrt.f32 %v418_v8  ;;  %v421_v13 = vadd.f32 1e-05, %v405_v9  ;;  %v404_v14 = vsub.f32 %v325_v7, %v388_v10  ;;  %v391_v17 = vmul.f32 %v983_v11, %v983_v11  ;;  %p823_p0 = pnand %p822_p13, %p816_p10 }
 0x10c   :  { %v987_v19 = vpop.f32.mrf.mxu0  ;;  %v335_v20 = vpop.f32.mrf.mxu1 }
 0x10d   :  { %751 = vrsqrt.f32 %v421_v13  ;;  %v420_v21 = vadd.f32 1e-05, %v404_v14  ;;  %v407_v24 = vsub.f32 %v725_v12, %v391_v17  ;;  %v390_v25 = vmul.f32 %v987_v19, %v987_v19 }
 0x10e   :  { %v991_v28 = vpop.f32.mrf.mxu0  ;;  %v728_v29 = vpop.f32.mrf.mxu1  ;;  %v453_v12 = vsub.f32 %v906_v26, %v975_v1  ;;  %v452_v26 = vsub.f32 %v898_v23, %v979_v6 }
 0x10f   :  { %753 = vrsqrt.f32 %v420_v21  ;;  %v423_v32 = vadd.f32 1e-05, %v407_v24  ;;  %v406_v33 = vsub.f32 %v335_v20, %v390_v25  ;;  %v393_v36 = vmul.f32 %v991_v28, %v991_v28 }
 0x110   :  { %v996_v40 = vpop.f32.mrf.mxu0  ;;  %v345_v41 = vpop.f32.mrf.mxu1 }
 0x111   :  { %755 = vrsqrt.f32 %v423_v32  ;;  %v422_v44 = vadd.f32 1e-05, %v406_v33  ;;  %v409_v45 = vsub.f32 %v728_v29, %v393_v36  ;;  %v392_v47 = vmul.f32 %v996_v40, %v996_v40 }
 0x112   :  { %v744_v49 = vpop.eup %743  ;;  %v1007_v53 = vpop.f32.mrf.mxu0 }
 0x113   :  { %v731_v16 = vpop.f32.mrf.mxu1  ;;  %v465_v48 = vmul.f32 %v744_v49, %v449_v37  ;;  %757 = vrsqrt.f32 %v422_v44  ;;  %v425_v54 = vadd.f32 1e-05, %v409_v45  ;;  %v408_v56 = vsub.f32 %v345_v41, %v392_v47 }
 0x114   :  { %v746_v57 = vpop.eup %745  ;;  %v395_v61 = vmul.f32 %v1007_v53, %v1007_v53  ;;  %v1018_v15 = vpop.f32.mrf.mxu0  ;;  %v455_v49 = vsub.f32 %v916_v30, %v983_v11 }
 0x115   :  { %v355_v51 = vpop.f32.mrf.mxu1  ;;  %v488_v62 = vmul.f32 %v1003_v50, %v465_v48  ;;  %v464_v63 = vmul.f32 %v746_v57, %v448_v52  ;;  %759 = vrsqrt.f32 %v425_v54  ;;  %v424_v0 = vadd.f32 1e-05, %v408_v56 }
 0x116   :  { %v748_v2 = vpop.eup %747  ;;  %v411_v4 = vsub.f32 %v731_v16, %v395_v61  ;;  %v394_v5 = vmul.f32 %v1018_v15, %v1018_v15  ;;  %v1025_v22 = vpop.f32.mrf.mxu0 }
 0x117   :  { %v734_v55 = vpop.f32.mrf.mxu1  ;;  %v511_v7 = vadd.f32 %v1012_v58, %v488_v62  ;;  %v487_v8 = vmul.f32 %v1003_v50, %v464_v63  ;;  %v467_v9 = vmul.f32 %v748_v2, %v451_v59  ;;  %761 = vrsqrt.f32 %v424_v0 }
 0x118   :  { %v750_v10 = vpop.eup %749  ;;  %v427_v13 = vadd.f32 1e-05, %v411_v4  ;;  %v410_v14 = vsub.f32 %v355_v51, %v394_v5  ;;  %v397_v18 = vmul.f32 %v1025_v22, %v1025_v22  ;;  %v1033_v60 = vpop.f32.mrf.mxu0  ;;  %v454_v59 = vsub.f32 %v908_v27, %v987_v19 }
 0x119   :  { %v365_v17 = vpop.f32.mrf.mxu1  ;;  %527 = vst [vmem:[#allocation7 + $0x8] sm:$0xff] %v511_v7  ;;  %v510_v20 = vadd.f32 %v1012_v58, %v487_v8  ;;  %v490_v21 = vmul.f32 %v1003_v50, %v467_v9  ;;  %v466_v24 = vmul.f32 %v750_v10, %v450_v3  ;;  %v396_v25 = vmul.f32 %v1033_v60, %v1033_v60 }
 0x11a   :  { %v752_v29 = vpop.eup %751  ;;  %763 = vrsqrt.f32 %v427_v13  ;;  %v426_v1 = vadd.f32 1e-05, %v410_v14  ;;  %v413_v32 = vsub.f32 %v734_v55, %v397_v18  ;;  %v1041_v33 = vpop.f32.mrf.mxu0  ;;  %v457_v5 = vsub.f32 %v926_v34, %v991_v28 }
 0x11b   :  { %526 = vst [vmem:[#allocation7] sm:$0xff] %v510_v20  ;;  %v513_v36 = vadd.f32 %v1012_v58, %v490_v21  ;;  %v489_v37 = vmul.f32 %v1003_v50, %v466_v24  ;;  %v469_v41 = vmul.f32 %v752_v29, %v453_v12  ;;  %v412_v44 = vsub.f32 %v365_v17, %v396_v25  ;;  %v737_v45 = vpop.f32.mrf.mxu1 }
 0x11c   :  { %v754_v47 = vpop.eup %753  ;;  %765 = vrsqrt.f32 %v426_v1  ;;  %v429_v52 = vadd.f32 1e-05, %v413_v32  ;;  %v399_v23 = vmul.f32 %v1041_v33, %v1041_v33  ;;  %v1049_v6 = vpop.f32.mrf.mxu0  ;;  %v456_v12 = vsub.f32 %v918_v31, %v996_v40 }
 0x11d   :  { %529 = vst [vmem:[#allocation7 + $0x18] sm:$0xff] %v513_v36  ;;  %v512_v16 = vadd.f32 %v1012_v58, %v489_v37  ;;  %v492_v48 = vmul.f32 %v1003_v50, %v469_v41  ;;  %v468_v54 = vmul.f32 %v754_v47, %v452_v26  ;;  %v428_v56 = vadd.f32 1e-05, %v412_v44  ;;  %v375_v63 = vpop.f32.mrf.mxu1 }
 0x11e   :  { %v756_v57 = vpop.eup %755  ;;  %767 = vrsqrt.f32 %v429_v52  ;;  %v415_v30 = vsub.f32 %v737_v45, %v399_v23  ;;  %v398_v11 = vmul.f32 %v1049_v6, %v1049_v6  ;;  %v459_v28 = vsub.f32 %v936_v38, %v1007_v53 }
 0x11f   :  { %528 = vst [vmem:[#allocation7 + $0x10] sm:$0xff] %v512_v16  ;;  %v515_v61 = vadd.f32 %v1012_v58, %v492_v48  ;;  %v491_v51 = vmul.f32 %v1003_v50, %v468_v54  ;;  %v471_v62 = vmul.f32 %v756_v57, %v455_v49  ;;  %769 = vrsqrt.f32 %v428_v56 }
 0x120   :  { %v758_v0 = vpop.eup %757  ;;  %v431_v2 = vadd.f32 1e-05, %v415_v30  ;;  %v414_v3 = vsub.f32 %v375_v63, %v398_v11  ;;  %v458_v31 = vsub.f32 %v928_v35, %v1018_v15  ;;  %v461_v38 = vsub.f32 %v946_v42, %v1025_v22 }
 0x121   :  { %531 = vst [vmem:[#allocation7 + $0x28] sm:$0xff] %v515_v61  ;;  %v514_v4 = vadd.f32 %v1012_v58, %v491_v51  ;;  %v494_v27 = vmul.f32 %v1003_v50, %v471_v62  ;;  %v470_v19 = vmul.f32 %v758_v0, %v454_v59  ;;  %v460_v1 = vsub.f32 %v938_v39, %v1033_v60 }
 0x122   :  { %v760_v55 = vpop.eup %759  ;;  %771 = vrsqrt.f32 %v431_v2  ;;  %v430_v7 = vadd.f32 1e-05, %v414_v3  ;;  %v463_v42 = vsub.f32 %v956_v46, %v1041_v33  ;;  %v462_v47 = vsub.f32 %v948_v43, %v1049_v6 }
 0x123   :  { %530 = vst [vmem:[#allocation7 + $0x20] sm:$0xff] %v514_v4  ;;  %v517_v8 = vadd.f32 %v1012_v58, %v494_v27  ;;  %v493_v9 = vmul.f32 %v1003_v50, %v470_v19  ;;  %v473_v10 = vmul.f32 %v760_v55, %v457_v5 }
 0x124   :  { %v762_v13 = vpop.eup %761  ;;  %773 = vrsqrt.f32 %v430_v7 }
 0x125   :  { %533 = vst [vmem:[#allocation7 + $0x38] sm:$0xff] %v517_v8  ;;  %v516_v14 = vadd.f32 %v1012_v58, %v493_v9  ;;  %v496_v18 = vmul.f32 %v1003_v50, %v473_v10  ;;  %v472_v34 = vmul.f32 %v762_v13, %v456_v12 }
 0x127   :  { %v764_v17 = vpop.eup %763  ;;  %532 = vst [vmem:[#allocation7 + $0x30] sm:$0xff] %v516_v14  ;;  %v519_v20 = vadd.f32 %v1012_v58, %v496_v18  ;;  %v495_v21 = vmul.f32 %v1003_v50, %v472_v34 }
 0x128   :  { %v475_v24 = vmul.f32 %v764_v17, %v459_v28 }
 0x129   :  { %v766_v40 = vpop.eup %765  ;;  %535 = vst [vmem:[#allocation7 + $0x48] sm:$0xff] %v519_v20  ;;  %v518_v25 = vadd.f32 %v1012_v58, %v495_v21 }
 0x12a   :  { %v498_v29 = vmul.f32 %v1003_v50, %v475_v24  ;;  %v474_v26 = vmul.f32 %v766_v40, %v458_v31 }
 0x12b   :  { %v768_v53 = vpop.eup %767  ;;  %534 = vst [vmem:[#allocation7 + $0x40] sm:$0xff] %v518_v25 }
 0x12c   :  { %v770_v32 = vpop.eup %769  ;;  %v521_v36 = vadd.f32 %v1012_v58, %v498_v29  ;;  %v497_v35 = vmul.f32 %v1003_v50, %v474_v26  ;;  %v477_v15 = vmul.f32 %v768_v53, %v461_v38 }
 0x12d   :  { %v476_v37 = vmul.f32 %v770_v32, %v460_v1 }
 0x12e   :  { %537 = vst [vmem:[#allocation7 + $0x58] sm:$0xff] %v521_v36  ;;  %v520_v41 = vadd.f32 %v1012_v58, %v497_v35  ;;  %v500_v44 = vmul.f32 %v1003_v50, %v477_v15 }
 0x12f   :  { %v772_v22 = vpop.eup %771  ;;  %v499_v45 = vmul.f32 %v1003_v50, %v476_v37 }
 0x130   :  { %536 = vst [vmem:[#allocation7 + $0x50] sm:$0xff] %v520_v41  ;;  %v523_v39 = vadd.f32 %v1012_v58, %v500_v44  ;;  %v479_v60 = vmul.f32 %v772_v22, %v463_v42 }
 0x131   :  { %v774_v49 = vpop.eup %773  ;;  %v522_v52 = vadd.f32 %v1012_v58, %v499_v45 }
 0x132   :  { %539 = vst [vmem:[#allocation7 + $0x68] sm:$0xff] %v523_v39  ;;  %v502_v23 = vmul.f32 %v1003_v50, %v479_v60  ;;  %v478_v16 = vmul.f32 %v774_v49, %v462_v47 }
 0x133   :  { %538 = vst [vmem:[#allocation7 + $0x60] sm:$0xff] %v522_v52 }
 0x134   :  { %v525_v46 = vadd.f32 %v1012_v58, %v502_v23  ;;  %v501_v33 = vmul.f32 %v1003_v50, %v478_v16 }
 0x136   :  { %541 = vst [vmem:[#allocation7 + $0x78] sm:$0xff] %v525_v46  ;;  %v524_v48 = vadd.f32 %v1012_v58, %v501_v33 }
 0x138   :  { %540 = vst [vmem:[#allocation7 + $0x70] sm:$0xff] %v524_v48 }
 0x139   :  { %826 = shalt.err (!%p823_p0)
}
 0x13a   :  { %553 = dma.vmem_to_hbm [thread:$0]  %s548_s3, 2048, %s1106_s4, [#allocation4], %s842_s18, %s842_s18, %s843_s19  }
 0x13b   :  { %839 = dma.done.wait [#allocation4], 2048  }
 0x13c   :  { %840 = vsyncadd [#allocation4], 4294965248 }
 0x13d   :  { %557 = vsyncpa [#allocation3], 1 }
 0x13e   :  { %558 = vsyncpa [#allocation6], 1 }
 0x13f   :  { %559 = vsyncpa [#allocation4], 1 }

</bundles_post_ra>
